<compile_context>
chip_gen: v6e
topology: v6e:2x2x1
jax: 0.10.0
libtpu: 0.0.40
codegen_flags: <defaults>
</compile_context>

<pallas_src>
import jax
import jax.numpy as jnp
from jax.experimental import pallas as pl
from jax.experimental.pallas import tpu as pltpu


def _round_up(n, m):
    return ((n + m - 1) // m) * m


def odefunc_kernel(t_ref, x_ref, w1_ref, b1_ref, a1_ref, w2_ref, b2_ref, c_ref,
                   dx_ref, dl_ref, dv_ref):
    x = x_ref[...]                                      # (Bt, D) f32
    t = t_ref[0]                                        # scalar from SMEM

    # --- diffeq forward: time conditioning folded into one bias vreg ---
    bias_t = b1_ref[...] + t * a1_ref[...]              # (1, Hp)
    pre = jnp.dot(x, w1_ref[...],
                  preferred_element_type=jnp.float32) + bias_t
    h = jnp.tanh(pre)                                   # (Bt, Hp)  (EUP)
    dx = jnp.dot(h, w2_ref[...],
                 preferred_element_type=jnp.float32) + b2_ref[...]   # (Bt, D)

    # --- exact divergence (divergence_bf): c is precomputed outside ---
    dl = jnp.sum((1.0 - h * h) * c_ref[...], axis=1, keepdims=True)  # (Bt, 1)

    # --- kinetic-energy aug: dv = 0.5 * sum(dx**2) ---
    dv = 0.5 * jnp.sum(dx * dx, axis=1, keepdims=True)               # (Bt, 1)

    # Direct full-block stores — no lane-axis concatenate in the kernel.
    dx_ref[...] = dx
    dl_ref[...] = dl
    dv_ref[...] = dv


def prepare_diffeq_params(params, lane=128):
    """One-time, param-only precompute (hoisted out of the per-eval kernel).

    Pads the hidden axis to a multiple of `lane` (exactly preserves the math)
    and precomputes the divergence contraction c[k] = sum_i W1[i,k]*W2[k,i].
    Call this once before the ODE solve; reuse the result for every eval.
    """
    W1, b1, a1, W2, b2 = params
    D, H = W1.shape
    Hp = _round_up(H, lane)
    W1p = jnp.zeros((D, Hp), jnp.float32).at[:, :H].set(W1.astype(jnp.float32))
    b1p = jnp.zeros((1, Hp), jnp.float32).at[:, :H].set(b1.astype(jnp.float32))
    a1p = jnp.zeros((1, Hp), jnp.float32).at[:, :H].set(a1.astype(jnp.float32))
    W2p = jnp.zeros((Hp, D), jnp.float32).at[:H, :].set(W2.astype(jnp.float32))
    b2f = b2.astype(jnp.float32)
    c = jnp.sum(W1p * W2p.T, axis=0, keepdims=True)     # (1, Hp)
    return (W1p, b1p, a1p, W2p, b2f, c)


def odefunc_forward(t, x_aug, prepared, input_dim, block_b=512):
    """Pallas-backed ODEfunc.forward.

    `prepared` is the output of prepare_diffeq_params (weights padded to a
    lane-dense hidden axis + precomputed divergence contraction c).
    """
    x = x_aug[:, :input_dim].astype(jnp.float32)        # x = x_aug[:, :input_dim]
    B, D = x.shape
    W1p, b1p, a1p, W2p, b2, c = prepared
    Hp = W1p.shape[1]

    # Batch tiling: sublane-aligned tile, pad rows so the grid divides evenly.
    Bt = min(block_b, _round_up(B, 8))
    Bt = _round_up(Bt, 8)
    Bp = _round_up(B, Bt)
    if Bp != B:
        x = jnp.pad(x, ((0, Bp - B), (0, 0)))
    grid = (Bp // Bt,)

    t_arr = jnp.asarray(t, dtype=jnp.float32).reshape((1,))

    dx, dl, dv = pl.pallas_call(
        odefunc_kernel,
        out_shape=(
            jax.ShapeDtypeStruct((Bp, D), jnp.float32),
            jax.ShapeDtypeStruct((Bp, 1), jnp.float32),
            jax.ShapeDtypeStruct((Bp, 1), jnp.float32),
        ),
        grid=grid,
        in_specs=[
            pl.BlockSpec(memory_space=pltpu.MemorySpace.SMEM),   # t (scalar)
            pl.BlockSpec((Bt, D), lambda i: (i, 0)),             # x    (tiled over batch)
            pl.BlockSpec((D, Hp), lambda i: (0, 0)),             # W1p  (grid-invariant)
            pl.BlockSpec((1, Hp), lambda i: (0, 0)),             # b1p
            pl.BlockSpec((1, Hp), lambda i: (0, 0)),             # a1p
            pl.BlockSpec((Hp, D), lambda i: (0, 0)),             # W2p
            pl.BlockSpec((1, D), lambda i: (0, 0)),              # b2
            pl.BlockSpec((1, Hp), lambda i: (0, 0)),             # c (hoisted contraction)
        ],
        out_specs=(
            pl.BlockSpec((Bt, D), lambda i: (i, 0)),             # dx
            pl.BlockSpec((Bt, 1), lambda i: (i, 0)),             # dl
            pl.BlockSpec((Bt, 1), lambda i: (i, 0)),             # dv
        ),
        compiler_params=pltpu.CompilerParams(
            dimension_semantics=("parallel",),
            vmem_limit_bytes=32 * 1024 * 1024,                   # fits v7x's 64 MiB VMEM
        ),
    )(t_arr, x, W1p, b1p, a1p, W2p, b2, c)

    # Cheap XLA-side cat (matches torch.cat((dx, dl, dv), 1)); drop batch pad.
    out = jnp.concatenate([dx, dl, dv], axis=1)
    return out[:B]


# ---------------- pure-JAX reference (for correctness check) ----------------
def _diffeq_ref(t, x, params):
    W1, b1, a1, W2, b2 = params
    h = jnp.tanh(x @ W1 + b1 + t * a1)
    return h @ W2 + b2


def _odefunc_ref(t, x_aug, params, input_dim):
    x = x_aug[:, :input_dim]
    dx = _diffeq_ref(t, x, params)

    def single(xi):
        jac = jax.jacfwd(lambda xx: _diffeq_ref(t, xx[None, :], params)[0])(xi)
        return jnp.trace(jac)

    dl = jax.vmap(single)(x)[:, None]
    dv = 0.5 * jnp.sum(dx * dx, axis=1, keepdims=True)
    return jnp.concatenate([dx, dl, dv], axis=1)


if __name__ == "__main__":
    B, D, H = 8, 4, 32           # batch, input_dim, hidden width
    key = jax.random.PRNGKey(0)
    k1, k2, k3, k4, k5, k6 = jax.random.split(key, 6)

    # Deterministic synthetic parameters for the chosen diffeq.
    W1 = jax.random.normal(k1, (D, H), jnp.float32) * 0.3
    b1 = jax.random.normal(k2, (1, H), jnp.float32) * 0.1
    a1 = jax.random.normal(k3, (1, H), jnp.float32) * 0.1   # time-conditioning
    W2 = jax.random.normal(k4, (H, D), jnp.float32) * 0.3
    b2 = jax.random.normal(k5, (1, D), jnp.float32) * 0.1
    params = (W1, b1, a1, W2, b2)

    # Augmented state: (B, input_dim + 2) — data dims plus log-det & energy aug.
    x_aug = jax.random.normal(k6, (B, D + 2), jnp.float32)
    t = jnp.float32(0.37)

    # One-time hoisted precompute (reused across all ODE-solver evaluations).
    prepared = prepare_diffeq_params(params)

    out = odefunc_forward(t, x_aug, prepared, input_dim=D)
    out = jax.block_until_ready(out)

    ref = _odefunc_ref(t, x_aug, params, input_dim=D)
    assert out.shape == (B, D + 2), out.shape
    assert jnp.allclose(out, ref, atol=1e-5, rtol=1e-5), (out, ref)

    print("KERNEL_OK")
</pallas_src>

<mosaic_0001>
module attributes {stable_mosaic.version = 11 : i64} {
  func.func @odefunc_kernel(%arg0: i32, %arg1: memref<1xf32, #tpu.memory_space<smem>>, %arg2: memref<8x4xf32, #tpu.memory_space<vmem>>, %arg3: memref<4x128xf32, #tpu.memory_space<vmem>>, %arg4: memref<1x128xf32, #tpu.memory_space<vmem>>, %arg5: memref<1x128xf32, #tpu.memory_space<vmem>>, %arg6: memref<128x4xf32, #tpu.memory_space<vmem>>, %arg7: memref<1x4xf32, #tpu.memory_space<vmem>>, %arg8: memref<1x128xf32, #tpu.memory_space<vmem>>, %arg9: memref<8x4xf32, #tpu.memory_space<vmem>>, %arg10: memref<8x1xf32, #tpu.memory_space<vmem>>, %arg11: memref<8x1xf32, #tpu.memory_space<vmem>>) attributes {dimension_semantics = [#tpu.dimension_semantics<parallel>], iteration_bounds = array<i64: 1>, scalar_prefetch = 0 : i64, scratch_operands = 0 : i64, tpu.core_type = #tpu.core_type<tc>, window_params = [{transform_indices = @transform_0, window_bounds = array<i64: 1>}, {transform_indices = @transform_1, window_bounds = array<i64: 8, 4>}, {pipeline_mode = #tpu.pipeline_mode<synchronous>, transform_indices = @transform_2, window_bounds = array<i64: 4, 128>}, {pipeline_mode = #tpu.pipeline_mode<synchronous>, transform_indices = @transform_3, window_bounds = array<i64: 1, 128>}, {pipeline_mode = #tpu.pipeline_mode<synchronous>, transform_indices = @transform_4, window_bounds = array<i64: 1, 128>}, {pipeline_mode = #tpu.pipeline_mode<synchronous>, transform_indices = @transform_5, window_bounds = array<i64: 128, 4>}, {pipeline_mode = #tpu.pipeline_mode<synchronous>, transform_indices = @transform_6, window_bounds = array<i64: 1, 4>}, {pipeline_mode = #tpu.pipeline_mode<synchronous>, transform_indices = @transform_7, window_bounds = array<i64: 1, 128>}, {transform_indices = @transform_8, window_bounds = array<i64: 8, 4>}, {transform_indices = @transform_9, window_bounds = array<i64: 8, 1>}, {transform_indices = @transform_10, window_bounds = array<i64: 8, 1>}]} {
    %c0 = arith.constant 0 : index
    %c0_0 = arith.constant 0 : index
    %0 = vector.load %arg2[%c0, %c0_0] : memref<8x4xf32, #tpu.memory_space<vmem>>, vector<8x4xf32>
    %c0_1 = arith.constant 0 : index
    %1 = memref.load %arg1[%c0_1] : memref<1xf32, #tpu.memory_space<smem>>
    %c0_2 = arith.constant 0 : index
    %c0_3 = arith.constant 0 : index
    %2 = vector.load %arg4[%c0_2, %c0_3] : memref<1x128xf32, #tpu.memory_space<vmem>>, vector<1x128xf32>
    %c0_4 = arith.constant 0 : index
    %c0_5 = arith.constant 0 : index
    %3 = vector.load %arg5[%c0_4, %c0_5] : memref<1x128xf32, #tpu.memory_space<vmem>>, vector<1x128xf32>
    %4 = vector.broadcast %1 : f32 to vector<1x128xf32>
    %5 = arith.mulf %4, %3 : vector<1x128xf32>
    %6 = arith.addf %2, %5 : vector<1x128xf32>
    %c0_6 = arith.constant 0 : index
    %c0_7 = arith.constant 0 : index
    %7 = vector.load %arg3[%c0_6, %c0_7] : memref<4x128xf32, #tpu.memory_space<vmem>>, vector<4x128xf32>
    %cst = arith.constant dense<0.000000e+00> : vector<8x128xf32>
    %8 = tpu.matmul %0, %7, %cst {dimension_numbers = #tpu.dot_dimension_numbers<[1], [0], [0], [1], [0, 0, 1, 1], [], []>} : vector<8x4xf32>, vector<4x128xf32>, vector<8x128xf32> -> vector<8x128xf32>
    %9 = vector.broadcast %6 : vector<1x128xf32> to vector<8x128xf32>
    %10 = arith.addf %8, %9 : vector<8x128xf32>
    %11 = math.tanh %10 : vector<8x128xf32>
    %c0_8 = arith.constant 0 : index
    %c0_9 = arith.constant 0 : index
    %12 = vector.load %arg6[%c0_8, %c0_9] : memref<128x4xf32, #tpu.memory_space<vmem>>, vector<128x4xf32>
    %cst_10 = arith.constant dense<0.000000e+00> : vector<8x4xf32>
    %13 = tpu.matmul %11, %12, %cst_10 {dimension_numbers = #tpu.dot_dimension_numbers<[1], [0], [0], [1], [0, 0, 1, 1], [], []>} : vector<8x128xf32>, vector<128x4xf32>, vector<8x4xf32> -> vector<8x4xf32>
    %c0_11 = arith.constant 0 : index
    %c0_12 = arith.constant 0 : index
    %14 = vector.load %arg7[%c0_11, %c0_12] : memref<1x4xf32, #tpu.memory_space<vmem>>, vector<1x4xf32>
    %15 = vector.broadcast %14 : vector<1x4xf32> to vector<8x4xf32>
    %16 = arith.addf %13, %15 : vector<8x4xf32>
    %17 = arith.mulf %11, %11 : vector<8x128xf32>
    %cst_13 = arith.constant 1.000000e+00 : f32
    %18 = vector.broadcast %cst_13 : f32 to vector<8x128xf32>
    %19 = arith.subf %18, %17 : vector<8x128xf32>
    %c0_14 = arith.constant 0 : index
    %c0_15 = arith.constant 0 : index
    %20 = vector.load %arg8[%c0_14, %c0_15] : memref<1x128xf32, #tpu.memory_space<vmem>>, vector<1x128xf32>
    %21 = vector.broadcast %20 : vector<1x128xf32> to vector<8x128xf32>
    %22 = arith.mulf %19, %21 : vector<8x128xf32>
    %cst_16 = arith.constant dense<0.000000e+00> : vector<8xf32>
    %23 = vector.multi_reduction <add>, %22, %cst_16 [1] : vector<8x128xf32> to vector<8xf32>
    %24 = vector.shape_cast %23 : vector<8xf32> to vector<8x1xf32>
    %25 = arith.mulf %16, %16 : vector<8x4xf32>
    %cst_17 = arith.constant dense<0.000000e+00> : vector<8xf32>
    %26 = vector.multi_reduction <add>, %25, %cst_17 [1] : vector<8x4xf32> to vector<8xf32>
    %27 = vector.shape_cast %26 : vector<8xf32> to vector<8x1xf32>
    %cst_18 = arith.constant 5.000000e-01 : f32
    %28 = vector.broadcast %cst_18 : f32 to vector<8x1xf32>
    %29 = arith.mulf %28, %27 : vector<8x1xf32>
    %c0_19 = arith.constant 0 : index
    %c0_20 = arith.constant 0 : index
    %30 = vector.load %arg9[%c0_19, %c0_20] : memref<8x4xf32, #tpu.memory_space<vmem>>, vector<8x4xf32>
    tpu.vector_store %arg9[%c0_19, %c0_20], %16 {strides = array<i32>} : memref<8x4xf32, #tpu.memory_space<vmem>>, vector<8x4xf32>,
    %c0_21 = arith.constant 0 : index
    %c0_22 = arith.constant 0 : index
    %31 = vector.load %arg10[%c0_21, %c0_22] : memref<8x1xf32, #tpu.memory_space<vmem>>, vector<8x1xf32>
    tpu.vector_store %arg10[%c0_21, %c0_22], %24 {strides = array<i32>} : memref<8x1xf32, #tpu.memory_space<vmem>>, vector<8x1xf32>,
    %c0_23 = arith.constant 0 : index
    %c0_24 = arith.constant 0 : index
    %32 = vector.load %arg11[%c0_23, %c0_24] : memref<8x1xf32, #tpu.memory_space<vmem>>, vector<8x1xf32>
    tpu.vector_store %arg11[%c0_23, %c0_24], %29 {strides = array<i32>} : memref<8x1xf32, #tpu.memory_space<vmem>>, vector<8x1xf32>,
    return
  }
  func.func @transform_0(%arg0: i32) -> i32 {
    %c0_i32 = arith.constant 0 : i32
    %c0_i32_0 = arith.constant 0 : i32
    return %c0_i32 : i32
  }
  func.func @transform_1(%arg0: i32) -> (i32, i32) {
    %c0_i32 = arith.constant 0 : i32
    %c0_i32_0 = arith.constant 0 : i32
    return %arg0, %c0_i32 : i32, i32
  }
  func.func @transform_2(%arg0: i32) -> (i32, i32) {
    %c0_i32 = arith.constant 0 : i32
    %c0_i32_0 = arith.constant 0 : i32
    %c0_i32_1 = arith.constant 0 : i32
    return %c0_i32, %c0_i32_0 : i32, i32
  }
  func.func @transform_3(%arg0: i32) -> (i32, i32) {
    %c0_i32 = arith.constant 0 : i32
    %c0_i32_0 = arith.constant 0 : i32
    %c0_i32_1 = arith.constant 0 : i32
    return %c0_i32, %c0_i32_0 : i32, i32
  }
  func.func @transform_4(%arg0: i32) -> (i32, i32) {
    %c0_i32 = arith.constant 0 : i32
    %c0_i32_0 = arith.constant 0 : i32
    %c0_i32_1 = arith.constant 0 : i32
    return %c0_i32, %c0_i32_0 : i32, i32
  }
  func.func @transform_5(%arg0: i32) -> (i32, i32) {
    %c0_i32 = arith.constant 0 : i32
    %c0_i32_0 = arith.constant 0 : i32
    %c0_i32_1 = arith.constant 0 : i32
    return %c0_i32, %c0_i32_0 : i32, i32
  }
  func.func @transform_6(%arg0: i32) -> (i32, i32) {
    %c0_i32 = arith.constant 0 : i32
    %c0_i32_0 = arith.constant 0 : i32
    %c0_i32_1 = arith.constant 0 : i32
    return %c0_i32, %c0_i32_0 : i32, i32
  }
  func.func @transform_7(%arg0: i32) -> (i32, i32) {
    %c0_i32 = arith.constant 0 : i32
    %c0_i32_0 = arith.constant 0 : i32
    %c0_i32_1 = arith.constant 0 : i32
    return %c0_i32, %c0_i32_0 : i32, i32
  }
  func.func @transform_8(%arg0: i32) -> (i32, i32) {
    %c0_i32 = arith.constant 0 : i32
    %c0_i32_0 = arith.constant 0 : i32
    return %arg0, %c0_i32 : i32, i32
  }
  func.func @transform_9(%arg0: i32) -> (i32, i32) {
    %c0_i32 = arith.constant 0 : i32
    %c0_i32_0 = arith.constant 0 : i32
    return %arg0, %c0_i32 : i32, i32
  }
  func.func @transform_10(%arg0: i32) -> (i32, i32) {
    %c0_i32 = arith.constant 0 : i32
    %c0_i32_0 = arith.constant 0 : i32
    return %arg0, %c0_i32 : i32, i32
  }
}

</mosaic_0001>

<bundles_post_ra>
// kernel: tpu_custom_call.1
= control target key start
LH: loop header
LB: loop body
LE: loop exit
PB: predicated region body
PF: predicated region fallthrough
CT: control target
= control target key end

     0   :  { %vm51_vm0 = vcmask 1043456   ;;  %vm47_vm1 = vcmask 31744   ;;  %v319_v0 = vmov 0.0   ;;  %vm320_vm2 = vmmov 0   ;;  %s457_s2 = inlined_call_operand.vmem [shape: f32[4,128], index: 2, kind: input, shape index: {}]   ;;  %s458_s1 = inlined_call_operand.vmem [shape: f32[8,4], index: 1, kind: input, shape index: {}]   ;;  %s459_s5 = inlined_call_operand.vmem [shape: f32[128,4], index: 5, kind: input, shape index: {}]   ;;  %s460_s0 = inlined_call_operand.<no memory space> [shape: f32[1], index: 0, kind: input, shape index: {}]   ;;  %s461_s4 = inlined_call_operand.vmem [shape: f32[1,128], index: 4, kind: input, shape index: {}]   ;;  %s462_s3 = inlined_call_operand.vmem [shape: f32[1,128], index: 3, kind: input, shape index: {}]   ;;  %s463_s6 = inlined_call_operand.vmem [shape: f32[1,4], index: 6, kind: input, shape index: {}]   ;;  %s464_s8 = inlined_call_operand.vmem [shape: f32[8,4], index: 8, kind: output, shape index: {0}]   ;;  %s465_s7 = inlined_call_operand.vmem [shape: f32[1,128], index: 7, kind: input, shape index: {}]   ;;  %s466_s10 = inlined_call_operand.vmem [shape: f32[8,1], index: 10, kind: output, shape index: {2}]   ;;  %s467_s9 = inlined_call_operand.vmem [shape: f32[8,1], index: 9, kind: output, shape index: {1}]  }
   0x1   :  { %275 = vmatprep.subr.mxu0 %v319_v0  ;;  %v40_v1 = vld [vmem:[%s457_s2] sm:$0xf]  ;;  %277 = vmatprep.mubr.msk.f32.mxu0 %vm320_vm2, %v319_v0  ;;  %v141_v3 = vld [vmem:[%s459_s5 + $0x78] sm:$0xff]  ;;  %v140_v4 = vld [vmem:[%s459_s5 + $0x70] sm:$0xff]  ;;  %v42_v19 = vlaneseq  ;;  %v37_v21 = vstv %s460_s0  ;;  %vm237_vm3 = vcmask 7168  }
   0x2   :  { %v33_v2 = vld [vmem:[%s458_s1] sm:$0xff]  ;;  %276 = vmatpush3.msk.msra.mxu0 %vm51_vm0, %v40_v1  ;;  %280 = vmatprep.subr.mxu1 %v319_v0  ;;  %v139_v5 = vld [vmem:[%s459_s5 + $0x68] sm:$0xff]  ;;  %v137_v7 = vld [vmem:[%s459_s5 + $0x58] sm:$0xff] }
   0x3   :  { %278 = vmatmul.mubr.msk.f32.vlgmr.msra.gmra.mxu0 %vm47_vm1, %v33_v2  ;;  %281 = vmatpush3.msra.mxu1 %v141_v3  ;;  %v138_v6 = vld [vmem:[%s459_s5 + $0x60] sm:$0xff]  ;;  %v136_v8 = vld [vmem:[%s459_s5 + $0x50] sm:$0xff]  ;;  %v135_v9 = vld [vmem:[%s459_s5 + $0x48] sm:$0xff]  ;;  %v43_v23 = vshrl.u32 %v42_v19, 7 }
   0x4   :  { %282 = vmatprep.subr.mxu1 %v319_v0  ;;  %312 = vmatprep.mubr.msk.f32.mxu1 %vm320_vm2, %v319_v0  ;;  %v134_v10 = vld [vmem:[%s459_s5 + $0x40] sm:$0xff]  ;;  %v133_v11 = vld [vmem:[%s459_s5 + $0x38] sm:$0xff]  ;;  %v132_v12 = vld [vmem:[%s459_s5 + $0x30] sm:$0xff] }
   0x5   :  { %283 = vmatpush3.msra.mxu1 %v140_v4  ;;  %v131_v13 = vld [vmem:[%s459_s5 + $0x28] sm:$0xff]  ;;  %v130_v14 = vld [vmem:[%s459_s5 + $0x20] sm:$0xff]  ;;  %v129_v15 = vld [vmem:[%s459_s5 + $0x18] sm:$0xff]  ;;  %v44_v26 = vsub.s32 0, %v43_v23 }
   0x6   :  { %284 = vmatprep.subr.mxu1 %v319_v0  ;;  %v128_v16 = vld [vmem:[%s459_s5 + $0x10] sm:$0xff]  ;;  %v127_v17 = vld [vmem:[%s459_s5 + $0x8] sm:$0xff]  ;;  %v126_v18 = vld [vmem:[%s459_s5] sm:$0xff] }
   0x7   :  { %285 = vmatpush3.msra.mxu1 %v139_v5  ;;  %v36_v20 = vld [vmem:[%s461_s4] sm:$0x1] }
   0x8   :  { %286 = vmatprep.subr.mxu1 %v319_v0  ;;  %v38_v22 = vmul.f32 %v37_v21, %v36_v20  ;;  %v35_v24 = vld [vmem:[%s462_s3] sm:$0x1] }
   0x9   :  { %287 = vmatpush3.msra.mxu1 %v138_v6  ;;  %v254_v32 = vld [vmem:[%s463_s6] ss:$0 sm:$0xff] }
   0xa   :  { %288 = vmatprep.subr.mxu1 %v319_v0  ;;  %v39_v25 = vadd.f32 %v38_v22, %v35_v24  ;;  %v255_v40 = vld [vmem:[%s465_s7] ss:$0 sm:$0xff] }
   0xb   :  { %289 = vmatpush3.msra.mxu1 %v137_v7 }
   0xc   :  { %290 = vmatprep.subr.mxu1 %v319_v0  ;;  %v45_v27 = vrot.slane %v39_v25, %v44_v26 }
   0xd   :  { %291 = vmatpush3.msra.mxu1 %v136_v8 }
   0xe   :  { %292 = vmatprep.subr.mxu1 %v319_v0 }
   0xf   :  { %293 = vmatpush3.msra.mxu1 %v135_v9 }
  0x10   :  { %294 = vmatprep.subr.mxu1 %v319_v0 }
  0x11   :  { %295 = vmatpush3.msra.mxu1 %v134_v10 }
  0x12   :  { %296 = vmatprep.subr.mxu1 %v319_v0 }
  0x13   :  { %297 = vmatpush3.msra.mxu1 %v133_v11 }
  0x14   :  { %298 = vmatprep.subr.mxu1 %v319_v0 }
  0x15   :  { %299 = vmatpush3.msra.mxu1 %v132_v12 }
  0x16   :  { %300 = vmatprep.subr.mxu1 %v319_v0 }
  0x17   :  { %301 = vmatpush3.msra.mxu1 %v131_v13 }
  0x18   :  { %302 = vmatprep.subr.mxu1 %v319_v0 }
  0x19   :  { %303 = vmatpush3.msra.mxu1 %v130_v14 }
  0x1a   :  { %304 = vmatprep.subr.mxu1 %v319_v0 }
  0x1b   :  { %305 = vmatpush3.msra.mxu1 %v129_v15 }
  0x1c   :  { %306 = vmatprep.subr.mxu1 %v319_v0 }
  0x1d   :  { %307 = vmatpush3.msra.mxu1 %v128_v16 }
  0x1e   :  { %308 = vmatprep.subr.mxu1 %v319_v0 }
  0x1f   :  { %309 = vmatpush3.msra.mxu1 %v127_v17 }
  0x20   :  { %310 = vmatprep.subr.mxu1 %v319_v0 }
  0x21   :  { %311 = vmatpush3.msra.mxu1 %v126_v18 }
  0xc3   :  { %v121_v28 = vpop.f32.mrf.mxu0 }
  0xc4   :  { %v122_v29 = vadd.f32 %v121_v28, %v45_v27 }
  0xc5   :  { %v279_v30 = vpop.f32.mrf.mxu0 }
  0xc6   :  { %317 = vtanh.f32 %v122_v29 }
  0xd3   :  { %v318_v31 = vpop.eup %317 }
  0xd4   :  { %313 = vmatmul.mubr.f32.vlgmr.msra.gmra.mxu1 %v318_v31  ;;  %v219_v34 = vmul.f32 %v318_v31, %v318_v31 }
  0xd6   :  { %v220_v38 = vsub.f32 1.0, %v219_v34 }
  0xd8   :  { %v228_v41 = vmul.f32 %v255_v40, %v220_v38 }
 0x194   :  { %v215_v33 = vpop.f32.mrf.mxu1 }
 0x195   :  { %v216_v35 = vadd.f32 %v254_v32, %v215_v33 }
 0x196   :  { %v314_v36 = vpop.f32.mrf.mxu1 }
 0x197   :  { %236 = vst.msk [vmem:[%s464_s8] sm:$0xff] %vm47_vm1, %v216_v35  ;;  %v231_v37 = vmul.f32 %v216_v35, %v216_v35 }
 0x199   :  { %v232_v39 = vsel %vm47_vm1, %v231_v37, 0.0 }
 0x19a   :  { %233 = vadd.xlane.f32.xlu0 %v232_v39 }
 0x19e   :  { %229 = vadd.xlane.f32.xlu0 %v228_v41 }
 0x223   :  { %v234_v42 = vpop.xlane.xlu0 %233 }
 0x224   :  { %v235_v43 = vmul.f32 0.5, %v234_v42 }
 0x226   :  { %239 = vst.msk [vmem:[%s466_s10] sm:$0xff] %vm237_vm3, %v235_v43 }
 0x227   :  { %v230_v44 = vpop.xlane.xlu0 %229 }
 0x228   :  { %238 = vst.msk [vmem:[%s467_s9] sm:$0xff] %vm237_vm3, %v230_v44 }

</bundles_post_ra>
